<compile_context>
chip_gen: v6e
topology: v6e:2x2x1
jax: 0.10.0
libtpu: 0.0.40
codegen_flags: <defaults>
</compile_context>

<pallas_src>
import functools

import jax
import jax.numpy as jnp
from jax.experimental import pallas as pl
from jax.experimental.pallas import tpu as pltpu

_LANES = 128
_LOG2 = 0.6931471805599453
_NUM_CORES = 2                        # v7x has 2 TensorCores/chip; harmless on 1-TC chips
_DMA_TILE_BYTES = 4 * 1024 * 1024     # native-dtype DMA cap per input per step
_WORK_TILE_BYTES = 2 * 1024 * 1024    # f32 working-set cap per step (in-kernel cast)
_VMEM_LIMIT_BYTES = 32 * 1024 * 1024  # explicit scoped-VMEM budget (OK on v5e/v6e/v7x)


def _logcosh_kernel(y_ref, yp_ref, o_ref, acc_ref, *,
                    full_rows, rem_cols, total_steps, steps_per_core, acc_rows):
    c = pl.program_id(0)               # core (leading "parallel" axis)
    s = pl.program_id(1)               # step within this core's range
    gstep = c * steps_per_core + s     # global tile index
    tm, cols = y_ref.shape

    def logcosh_tile():
        # In-kernel cast (inputs may be bf16/fp16); accumulate in f32.
        x = (y_ref[...].astype(jnp.float32) - yp_ref[...].astype(jnp.float32)) \
            + jnp.float32(1e-12)
        ax = jnp.abs(x)
        # log(cosh(x)) = |x| + log1p(exp(-2|x|)) - log(2)   (numerically stable)
        return ax + jnp.log1p(jnp.exp(jnp.float32(-2.0) * ax)) - jnp.float32(_LOG2)

    def fold(v):
        # Pure-VPU fold onto the persistent accumulator; no cross-lane XLU here.
        return v.reshape(tm // acc_rows, acc_rows, cols).sum(axis=0)

    @pl.when(s == 0)
    def _():
        acc_ref[...] = jnp.zeros_like(acc_ref)

    @pl.when(gstep < total_steps - 1)
    def _():
        # All non-last tiles contain only valid elements: unmasked accumulate.
        acc_ref[...] += fold(logcosh_tile())

    @pl.when(gstep == total_steps - 1)
    def _():
        # Last real tile: mask padding / partial-block garbage.  Row/col
        # comparison (not a flat index) so int32 never overflows.
        val = logcosh_tile()
        row_ids = jax.lax.broadcasted_iota(jnp.int32, (tm, cols), 0) + gstep * tm
        col_ids = jax.lax.broadcasted_iota(jnp.int32, (tm, cols), 1)
        valid = (row_ids < full_rows) | ((row_ids == full_rows) & (col_ids < rem_cols))
        acc_ref[...] += fold(jnp.where(valid, val, jnp.float32(0.0)))

    # gstep > total_steps - 1: phantom step from an uneven core split; its input
    # block index is clamped in the index_map and all compute is skipped.

    @pl.when(s == steps_per_core - 1)
    def _():
        # Per-core partial sums as one lane-dense (8,128) block (full-width,
        # unmasked store); the tiny final reduction happens in the wrapper.
        o_ref[...] = acc_ref[...].reshape(acc_rows // 8, 8, cols).sum(axis=0)


def _round_up(x, m):
    return ((x + m - 1) // m) * m


@jax.jit
def logcosh_loss(y_t, y_prime_t):
    assert y_t.shape == y_prime_t.shape
    n = y_t.size                                     # static under jit

    yf = y_t.reshape(-1)
    ypf = y_prime_t.reshape(-1)

    # Flat length -> multiple of 8*128 so the (rows,128) view is (8,128)-tile
    # aligned.  No copy for the common n % 1024 == 0 case; any padding garbage
    # lives in the last tile and is masked there.
    padded = _round_up(n, 8 * _LANES)
    if padded != n:
        yf = jnp.pad(yf, (0, padded - n))
        ypf = jnp.pad(ypf, (0, padded - n))
    rows = padded // _LANES                          # multiple of 8

    # Tile rows, sized in bytes (dtype-aware DMA cap + f32 working-set cap).
    elem_bytes = jnp.dtype(y_t.dtype).itemsize
    tm_cap = min(_DMA_TILE_BYTES // (_LANES * elem_bytes),
                 _WORK_TILE_BYTES // (_LANES * 4))
    tm_cap = max(64, (tm_cap // 64) * 64)            # multiple of 64 for the acc fold
    tm = min(rows, tm_cap)
    total_steps = pl.cdiv(rows, tm)

    # Dual-TensorCore split (v7x).  Only split when there are enough tiles that
    # the (at most one) phantom tile is noise; on 1-TC chips the leading
    # "parallel" axis simply runs serially with identical results.
    cores = _NUM_CORES if total_steps >= 4 * _NUM_CORES else 1
    steps_per_core = pl.cdiv(total_steps, cores)

    # Widest accumulator whose height divides the tile (64 in the common case).
    acc_rows = max(a for a in (64, 32, 16, 8) if tm % a == 0)

    y2d = yf.reshape(rows, _LANES)
    yp2d = ypf.reshape(rows, _LANES)

    kernel = functools.partial(
        _logcosh_kernel,
        full_rows=n // _LANES, rem_cols=n % _LANES,
        total_steps=total_steps, steps_per_core=steps_per_core,
        acc_rows=acc_rows)

    def in_map(c, s):
        # Clamp phantom steps (uneven core split) onto the last real block;
        # the kernel skips their compute entirely.
        return (jnp.minimum(c * steps_per_core + s, total_steps - 1), 0)

    partials = pl.pallas_call(
        kernel,
        out_shape=jax.ShapeDtypeStruct((8 * cores, _LANES), jnp.float32),
        grid_spec=pltpu.PrefetchScalarGridSpec(
            num_scalar_prefetch=0,
            grid=(cores, steps_per_core),
            in_specs=[
                pl.BlockSpec((tm, _LANES), in_map),
                pl.BlockSpec((tm, _LANES), in_map),
            ],
            out_specs=pl.BlockSpec((8, _LANES), lambda c, s: (c, 0)),
            scratch_shapes=[pltpu.VMEM((acc_rows, _LANES), jnp.float32)],
        ),
        compiler_params=pltpu.CompilerParams(
            dimension_semantics=("parallel", "arbitrary"),
            vmem_limit_bytes=_VMEM_LIMIT_BYTES,
        ),
    )(y2d, yp2d)

    # Tiny (<= 2048-element) cross-core / cross-lane reduction + mean, in XLA.
    return jnp.sum(partials) / n


if __name__ == "__main__":
    key = jax.random.PRNGKey(0)
    k1, k2 = jax.random.split(key)
    # Small NCHW-like tensors; the loss is shape-agnostic (elementwise + mean).
    y_t = jax.random.normal(k1, (2, 4, 16, 16), dtype=jnp.float32)
    y_prime_t = jax.random.normal(k2, (2, 4, 16, 16), dtype=jnp.float32)

    loss = logcosh_loss(y_t, y_prime_t)
    jax.block_until_ready(loss)

    # Pure-JAX reference check (same math as the PyTorch module).
    ref = jnp.mean(jnp.log(jnp.cosh((y_t - y_prime_t) + 1e-12)))
    assert jnp.allclose(loss, ref, rtol=1e-5, atol=1e-5), (loss, ref)

    print("KERNEL_OK")
</pallas_src>

<mosaic_0001>
module attributes {stable_mosaic.version = 11 : i64} {
  func.func @_logcosh_kernel(%arg0: i32, %arg1: i32, %arg2: memref<16x128xf32, #tpu.memory_space<vmem>>, %arg3: memref<16x128xf32, #tpu.memory_space<vmem>>, %arg4: memref<8x128xf32, #tpu.memory_space<vmem>>, %arg5: memref<16x128xf32, #tpu.memory_space<vmem>>) attributes {dimension_semantics = [#tpu.dimension_semantics<parallel>, #tpu.dimension_semantics<arbitrary>], iteration_bounds = array<i64: 1, 1>, scalar_prefetch = 0 : i64, scratch_operands = 1 : i64, tpu.core_type = #tpu.core_type<tc>, window_params = [{transform_indices = @transform_0, window_bounds = array<i64: 16, 128>}, {transform_indices = @transform_1, window_bounds = array<i64: 16, 128>}, {transform_indices = @transform_2, window_bounds = array<i64: 8, 128>}]} {
    %c1_i32 = arith.constant 1 : i32
    %0 = arith.muli %arg0, %c1_i32 : i32
    %1 = arith.addi %0, %arg1 : i32
    %c0_i32 = arith.constant 0 : i32
    %2 = arith.cmpi eq, %arg1, %c0_i32 : i32
    %3 = arith.extui %2 : i1 to i32
    %c0_i32_0 = arith.constant 0 : i32
    %4 = arith.cmpi ne, %3, %c0_i32_0 : i32
    scf.if %4 {
      %cst = arith.constant 0.000000e+00 : f32
      %14 = vector.broadcast %cst : f32 to vector<16x128xf32>
      %c0 = arith.constant 0 : index
      %c0_7 = arith.constant 0 : index
      %15 = vector.load %arg5[%c0, %c0_7] : memref<16x128xf32, #tpu.memory_space<vmem>>, vector<16x128xf32>
      tpu.vector_store %arg5[%c0, %c0_7], %14 {strides = array<i32>} : memref<16x128xf32, #tpu.memory_space<vmem>>, vector<16x128xf32>,
    } else {
    }
    %c0_i32_1 = arith.constant 0 : i32
    %5 = arith.cmpi slt, %1, %c0_i32_1 : i32
    %6 = arith.extui %5 : i1 to i32
    %c0_i32_2 = arith.constant 0 : i32
    %7 = arith.cmpi ne, %6, %c0_i32_2 : i32
    scf.if %7 {
      %c0 = arith.constant 0 : index
      %c0_7 = arith.constant 0 : index
      %14 = vector.load %arg5[%c0, %c0_7] : memref<16x128xf32, #tpu.memory_space<vmem>>, vector<16x128xf32>
      %c0_8 = arith.constant 0 : index
      %c0_9 = arith.constant 0 : index
      %15 = vector.load %arg2[%c0_8, %c0_9] : memref<16x128xf32, #tpu.memory_space<vmem>>, vector<16x128xf32>
      %c0_10 = arith.constant 0 : index
      %c0_11 = arith.constant 0 : index
      %16 = vector.load %arg3[%c0_10, %c0_11] : memref<16x128xf32, #tpu.memory_space<vmem>>, vector<16x128xf32>
      %17 = arith.subf %15, %16 : vector<16x128xf32>
      %cst = arith.constant 9.99999996E-13 : f32
      %18 = vector.broadcast %cst : f32 to vector<16x128xf32>
      %19 = arith.addf %17, %18 : vector<16x128xf32>
      %20 = math.absf %19 : vector<16x128xf32>
      %cst_12 = arith.constant -2.000000e+00 : f32
      %21 = vector.broadcast %cst_12 : f32 to vector<16x128xf32>
      %22 = arith.mulf %21, %20 : vector<16x128xf32>
      %23 = math.exp %22 : vector<16x128xf32>
      %24 = math.log1p %23 : vector<16x128xf32>
      %25 = arith.addf %20, %24 : vector<16x128xf32>
      %cst_13 = arith.constant 0.693147182 : f32
      %26 = vector.broadcast %cst_13 : f32 to vector<16x128xf32>
      %27 = arith.subf %25, %26 : vector<16x128xf32>
      %28 = vector.shape_cast %27 : vector<16x128xf32> to vector<1x16x128xf32>
      %cst_14 = arith.constant dense<0.000000e+00> : vector<16x128xf32>
      %29 = vector.multi_reduction <add>, %28, %cst_14 [0] : vector<1x16x128xf32> to vector<16x128xf32>
      %30 = arith.addf %14, %29 : vector<16x128xf32>
      %c0_15 = arith.constant 0 : index
      %c0_16 = arith.constant 0 : index
      %31 = vector.load %arg5[%c0_15, %c0_16] : memref<16x128xf32, #tpu.memory_space<vmem>>, vector<16x128xf32>
      tpu.vector_store %arg5[%c0_15, %c0_16], %30 {strides = array<i32>} : memref<16x128xf32, #tpu.memory_space<vmem>>, vector<16x128xf32>,
    } else {
    }
    %c0_i32_3 = arith.constant 0 : i32
    %8 = arith.cmpi eq, %1, %c0_i32_3 : i32
    %9 = arith.extui %8 : i1 to i32
    %c0_i32_4 = arith.constant 0 : i32
    %10 = arith.cmpi ne, %9, %c0_i32_4 : i32
    scf.if %10 {
      %c0 = arith.constant 0 : index
      %c0_7 = arith.constant 0 : index
      %14 = vector.load %arg2[%c0, %c0_7] : memref<16x128xf32, #tpu.memory_space<vmem>>, vector<16x128xf32>
      %c0_8 = arith.constant 0 : index
      %c0_9 = arith.constant 0 : index
      %15 = vector.load %arg3[%c0_8, %c0_9] : memref<16x128xf32, #tpu.memory_space<vmem>>, vector<16x128xf32>
      %16 = arith.subf %14, %15 : vector<16x128xf32>
      %cst = arith.constant 9.99999996E-13 : f32
      %17 = vector.broadcast %cst : f32 to vector<16x128xf32>
      %18 = arith.addf %16, %17 : vector<16x128xf32>
      %19 = math.absf %18 : vector<16x128xf32>
      %cst_10 = arith.constant -2.000000e+00 : f32
      %20 = vector.broadcast %cst_10 : f32 to vector<16x128xf32>
      %21 = arith.mulf %20, %19 : vector<16x128xf32>
      %22 = math.exp %21 : vector<16x128xf32>
      %23 = math.log1p %22 : vector<16x128xf32>
      %24 = arith.addf %19, %23 : vector<16x128xf32>
      %cst_11 = arith.constant 0.693147182 : f32
      %25 = vector.broadcast %cst_11 : f32 to vector<16x128xf32>
      %26 = arith.subf %24, %25 : vector<16x128xf32>
      %27 = tpu.iota {dimensions = array<i32: 0>} : vector<16x128xi32>
      %c16_i32 = arith.constant 16 : i32
      %28 = arith.muli %1, %c16_i32 : i32
      %29 = vector.broadcast %28 : i32 to vector<16x128xi32>
      %30 = arith.addi %27, %29 : vector<16x128xi32>
      %31 = tpu.iota {dimensions = array<i32: 1>} : vector<16x128xi32>
      %c16_i32_12 = arith.constant 16 : i32
      %32 = vector.broadcast %c16_i32_12 : i32 to vector<16x128xi32>
      %33 = arith.cmpi slt, %30, %32 : vector<16x128xi32>
      %c16_i32_13 = arith.constant 16 : i32
      %34 = vector.broadcast %c16_i32_13 : i32 to vector<16x128xi32>
      %35 = arith.cmpi eq, %30, %34 : vector<16x128xi32>
      %c0_i32_14 = arith.constant 0 : i32
      %36 = vector.broadcast %c0_i32_14 : i32 to vector<16x128xi32>
      %37 = arith.cmpi slt, %31, %36 : vector<16x128xi32>
      %38 = arith.andi %35, %37 : vector<16x128xi1>
      %39 = arith.ori %33, %38 : vector<16x128xi1>
      %c0_15 = arith.constant 0 : index
      %c0_16 = arith.constant 0 : index
      %40 = vector.load %arg5[%c0_15, %c0_16] : memref<16x128xf32, #tpu.memory_space<vmem>>, vector<16x128xf32>
      %cst_17 = arith.constant 0.000000e+00 : f32
      %41 = vector.broadcast %cst_17 : f32 to vector<16x128xf32>
      %42 = arith.select %39, %26, %41 : vector<16x128xi1>, vector<16x128xf32>
      %43 = vector.shape_cast %42 : vector<16x128xf32> to vector<1x16x128xf32>
      %cst_18 = arith.constant dense<0.000000e+00> : vector<16x128xf32>
      %44 = vector.multi_reduction <add>, %43, %cst_18 [0] : vector<1x16x128xf32> to vector<16x128xf32>
      %45 = arith.addf %40, %44 : vector<16x128xf32>
      %c0_19 = arith.constant 0 : index
      %c0_20 = arith.constant 0 : index
      %46 = vector.load %arg5[%c0_19, %c0_20] : memref<16x128xf32, #tpu.memory_space<vmem>>, vector<16x128xf32>
      tpu.vector_store %arg5[%c0_19, %c0_20], %45 {strides = array<i32>} : memref<16x128xf32, #tpu.memory_space<vmem>>, vector<16x128xf32>,
    } else {
    }
    %c0_i32_5 = arith.constant 0 : i32
    %11 = arith.cmpi eq, %arg1, %c0_i32_5 : i32
    %12 = arith.extui %11 : i1 to i32
    %c0_i32_6 = arith.constant 0 : i32
    %13 = arith.cmpi ne, %12, %c0_i32_6 : i32
    scf.if %13 {
      %c0 = arith.constant 0 : index
      %c0_7 = arith.constant 0 : index
      %14 = vector.load %arg5[%c0, %c0_7] : memref<16x128xf32, #tpu.memory_space<vmem>>, vector<16x128xf32>
      %15 = vector.shape_cast %14 : vector<16x128xf32> to vector<2x8x128xf32>
      %cst = arith.constant dense<0.000000e+00> : vector<8x128xf32>
      %16 = vector.multi_reduction <add>, %15, %cst [0] : vector<2x8x128xf32> to vector<8x128xf32>
      %c0_8 = arith.constant 0 : index
      %c0_9 = arith.constant 0 : index
      %17 = vector.load %arg4[%c0_8, %c0_9] : memref<8x128xf32, #tpu.memory_space<vmem>>, vector<8x128xf32>
      tpu.vector_store %arg4[%c0_8, %c0_9], %16 {strides = array<i32>} : memref<8x128xf32, #tpu.memory_space<vmem>>, vector<8x128xf32>,
    } else {
    }
    return
  }
  func.func @transform_0(%arg0: i32, %arg1: i32) -> (i32, i32) {
    %c1_i32 = arith.constant 1 : i32
    %0 = arith.muli %arg0, %c1_i32 : i32
    %1 = arith.addi %0, %arg1 : i32
    %c0_i32 = arith.constant 0 : i32
    %2 = arith.minsi %1, %c0_i32 : i32
    %c0_i32_0 = arith.constant 0 : i32
    %c0_i32_1 = arith.constant 0 : i32
    return %2, %c0_i32_0 : i32, i32
  }
  func.func @transform_1(%arg0: i32, %arg1: i32) -> (i32, i32) {
    %c1_i32 = arith.constant 1 : i32
    %0 = arith.muli %arg0, %c1_i32 : i32
    %1 = arith.addi %0, %arg1 : i32
    %c0_i32 = arith.constant 0 : i32
    %2 = arith.minsi %1, %c0_i32 : i32
    %c0_i32_0 = arith.constant 0 : i32
    %c0_i32_1 = arith.constant 0 : i32
    return %2, %c0_i32_0 : i32, i32
  }
  func.func @transform_2(%arg0: i32, %arg1: i32) -> (i32, i32) {
    %c0_i32 = arith.constant 0 : i32
    %c0_i32_0 = arith.constant 0 : i32
    return %arg0, %c0_i32 : i32, i32
  }
}

</mosaic_0001>

<bundles_post_ra>
// kernel: logcosh_loss.1
= control target key start
LH: loop header
LB: loop body
LE: loop exit
PB: predicated region body
PF: predicated region fallthrough
CT: control target
= control target key end

     0   :  { %s267_s0 = inlined_call_operand.vmem [shape: f32[16,128], index: 0, kind: input, shape index: {}]   ;;  %s268_s1 = inlined_call_operand.vmem [shape: f32[16,128], index: 1, kind: input, shape index: {}]   ;;  %s269_s2 = inlined_call_operand.vmem [shape: f32[8,128], index: 2, kind: output, shape index: {}]  }
   0x1   :  { %v136_v0 = vld [vmem:[%s267_s0] sm:$0xff]  ;;  %v137_v1 = vld [vmem:[%s267_s0 + $0x8] sm:$0xff] }
   0x2   :  { %v138_v2 = vld [vmem:[%s268_s1] sm:$0xff]  ;;  %v139_v3 = vld [vmem:[%s268_s1 + $0x8] sm:$0xff] }
   0x3   :  { %v140_v4 = vsub.f32 %v136_v0, %v138_v2  ;;  %v141_v5 = vsub.f32 %v137_v1, %v139_v3 }
   0x5   :  { %v142_v6 = vadd.f32 1e-12, %v140_v4  ;;  %v143_v7 = vadd.f32 1e-12, %v141_v5 }
   0x7   :  { %v144_v8 = vand.u32 2147483647, %v142_v6  ;;  %v145_v9 = vand.u32 2147483647, %v143_v7 }
   0x9   :  { %v146_v10 = vmul.f32 -2.0, %v144_v8  ;;  %v147_v11 = vmul.f32 -2.0, %v145_v9 }
   0xb   :  { %v148_v12 = vmul.f32 1.442695, %v146_v10  ;;  %v150_v13 = vmul.f32 1.442695, %v147_v11 }
   0xd   :  { %229 = vpow2.f32 %v148_v12 }
   0xe   :  { %231 = vpow2.f32 %v150_v13 }
  0x1a   :  { %v230_v14 = vpop.eup %229 }
  0x1b   :  { %v232_v15 = vpop.eup %231  ;;  %v152_v16 = vadd.f32 1.0, %v230_v14  ;;  %v155_v18 = vmul.f32 -0.5, %v230_v14  ;;  %v158_v21 = vand.u32 2147483647, %v230_v14 }
  0x1c   :  { %v161_v17 = vadd.f32 1.0, %v232_v15  ;;  %v164_v19 = vmul.f32 -0.5, %v232_v15  ;;  %v167_v23 = vand.u32 2147483647, %v232_v15 }
  0x1d   :  { %233 = vlog2.f32 %v152_v16  ;;  %v156_v20 = vadd.f32 1.0, %v155_v18  ;;  %vm159_vm0 = vcmp.lt.f32.partialorder %v158_v21, 0.0004427343 }
  0x1e   :  { %235 = vlog2.f32 %v161_v17  ;;  %v165_v22 = vadd.f32 1.0, %v164_v19  ;;  %vm168_vm1 = vcmp.lt.f32.partialorder %v167_v23, 0.0004427343 }
  0x1f   :  { %v157_v24 = vmul.f32 %v230_v14, %v156_v20 }
  0x20   :  { %v166_v26 = vmul.f32 %v232_v15, %v165_v22 }
  0x2a   :  { %v234_v25 = vpop.eup %233 }
  0x2b   :  { %v236_v27 = vpop.eup %235  ;;  %v154_v28 = vmul.f32 0.6931472, %v234_v25 }
  0x2c   :  { %v163_v29 = vmul.f32 0.6931472, %v236_v27 }
  0x2d   :  { %v160_v30 = vsel %vm159_vm0, %v157_v24, %v154_v28 }
  0x2e   :  { %v169_v31 = vsel %vm168_vm1, %v166_v26, %v163_v29  ;;  %v170_v32 = vadd.f32 %v160_v30, %v144_v8 }
  0x2f   :  { %v171_v33 = vadd.f32 %v169_v31, %v145_v9 }
  0x30   :  { %v227_v34 = vadd.f32 -0.6931472, %v170_v32 }
  0x31   :  { %v228_v35 = vadd.f32 -0.6931472, %v171_v33 }
  0x33   :  { %v207_v36 = vadd.f32 %v228_v35, %v227_v34 }
  0x35   :  { %208 = vst [vmem:[%s269_s2] sm:$0xff] %v207_v36 }

</bundles_post_ra>
